<compile_context>
chip_gen: v7x
topology: tpu7x:2x2x1
jax: 0.10.0
libtpu: 0.0.40
codegen_flags: <defaults>
</compile_context>

<pallas_src>
import math
from functools import partial

import jax
import jax.numpy as jnp
from jax import lax
from jax.experimental import pallas as pl
from jax.experimental.pallas import tpu as pltpu


def _dstc_kernel(x_ref, w_ref, off_ref, o_ref, *, K, stride, dilation, TT):
    # x_ref:   (Q, stride, V*C_in)    bf16 — full per-batch phase-decomposed temporal slab
    # w_ref:   (K, V*C_in, V*C_out)   bf16 — block-diagonal over V, BN scale folded in
    # off_ref: (1, V*C_out)           f32  — fused conv-bias + BN offset
    # o_ref:   (TT, V*C_out)          f32  — lane-dense tile of TT output frames
    t0 = pl.program_id(1) * TT
    acc = jnp.zeros(o_ref.shape, jnp.float32)
    # K temporal taps as K MXU matmuls with M = TT rows, accumulated in f32.
    for k in range(K):
        q0 = t0 + (k * dilation) // stride        # dynamic offset on the major dim
        ph = (k * dilation) % stride              # static phase index
        xk = x_ref[pl.ds(q0, TT), ph, :]          # (TT, V*C_in) contiguous load
        acc = acc + jnp.dot(xk, w_ref[k], preferred_element_type=jnp.float32)
    o_ref[...] = (acc + off_ref[0, :]).astype(o_ref.dtype)


def downsampling_temp_conv(x_nchw, weight, bias, gamma, beta, running_mean,
                           running_var, *, kernel_size=7, stride=2, dilation=1,
                           eps=1e-5, time_tile=128):
    N, C_in, T, V = x_nchw.shape
    C_out = weight.shape[0]
    K = kernel_size
    pad = (K - 1) * dilation // 2
    T_out = (T + 2 * pad - dilation * (K - 1) - 1) // stride + 1

    TT = min(time_tile, T_out)
    num_t_tiles = pl.cdiv(T_out, TT)
    # Temporal reach of the last tap, expressed in phase-decomposed (q) rows.
    q_reach = ((K - 1) * dilation) // stride
    Q = max(num_t_tiles * TT + q_reach, -(-(T + 2 * pad) // stride))
    T_phys = Q * stride
    right_pad = T_phys - pad - T                  # >= pad by construction

    # ---- wrapper glue: layout + zero padding (kept outside the kernel) ----
    # TODO(synk): if the surrounding model carries channels-last activations, the two
    # full-tensor transposes (input and output) disappear entirely.
    x = jnp.transpose(x_nchw, (0, 2, 3, 1))                        # (N, T, V, C_in)
    x = jnp.pad(x, ((0, 0), (pad, right_pad), (0, 0), (0, 0)))     # (N, T_phys, V, C_in)
    x = x.reshape(N, Q, stride, V * C_in).astype(jnp.bfloat16)     # phase decomposition

    # Fold eval-mode BN: y = (conv(x) + b - mean) * gamma/sqrt(var+eps) + beta
    inv_std = lax.rsqrt(running_var + eps)
    scale = gamma * inv_std                                        # (C_out,)
    offset = beta + (bias - running_mean) * scale                  # (C_out,)

    # Conv weight (C_out, C_in, K, 1) -> (K, C_in, C_out), BN scale folded in.
    w = jnp.transpose(weight[..., 0], (2, 1, 0)) * scale[None, None, :]
    # Block-diagonal over V: (K, V*C_in, V*C_out). Exact (zeros elsewhere) and free on
    # the MXU while V*C_in, V*C_out fit inside one systolic-array tile.
    w_big = jnp.einsum('uv,kio->kuivo', jnp.eye(V, dtype=w.dtype), w)
    w_big = w_big.reshape(K, V * C_in, V * C_out).astype(jnp.bfloat16)

    off_row = jnp.tile(offset, V).reshape(1, V * C_out).astype(jnp.float32)

    kernel = partial(_dstc_kernel, K=K, stride=stride, dilation=dilation, TT=TT)

    out = pl.pallas_call(
        kernel,
        out_shape=jax.ShapeDtypeStruct((N, T_out, V * C_out), jnp.float32),
        grid_spec=pltpu.PrefetchScalarGridSpec(
            num_scalar_prefetch=0,
            grid=(N, num_t_tiles),
            in_specs=[
                # Full per-batch slab, resident across the time-tile axis.
                pl.BlockSpec((None, Q, stride, V * C_in), lambda n, t: (n, 0, 0, 0)),
                pl.BlockSpec((K, V * C_in, V * C_out), lambda n, t: (0, 0, 0)),
                pl.BlockSpec((1, V * C_out), lambda n, t: (0, 0)),
            ],
            out_specs=pl.BlockSpec((None, TT, V * C_out), lambda n, t: (n, t, 0)),
        ),
        compiler_params=pltpu.CompilerParams(
            dimension_semantics=("parallel", "parallel"),
            vmem_limit_bytes=32 * 1024 * 1024),
    )(x, w_big, off_row)

    # (N, T_out, V*C_out) -> (N, C_out, T_out, V) to match the nn.Conv2d NCHW contract.
    out = out.reshape(N, T_out, V, C_out)
    return jnp.transpose(out, (0, 3, 1, 2))


def _reference(x_nchw, weight, bias, gamma, beta, running_mean, running_var,
               *, stride=2, dilation=1, eps=1e-5):
    # Full-f32 module semantics: Conv2d + bias, then eval-mode BatchNorm2d.
    K = weight.shape[2]
    pad = (K - 1) * dilation // 2
    y = lax.conv_general_dilated(
        x_nchw, weight, window_strides=(stride, 1),
        padding=((pad, pad), (0, 0)), rhs_dilation=(dilation, 1),
        dimension_numbers=("NCHW", "OIHW", "NCHW"))
    y = y + bias[None, :, None, None]
    y = (y - running_mean[None, :, None, None]) * lax.rsqrt(
        running_var[None, :, None, None] + eps)
    return y * gamma[None, :, None, None] + beta[None, :, None, None]


def _reference_bf16(x_nchw, weight, bias, gamma, beta, running_mean, running_var,
                    *, stride=2, dilation=1, eps=1e-5):
    # Same bf16 rounding of x and of the scale-folded weight as the kernel (tight check).
    K = weight.shape[2]
    pad = (K - 1) * dilation // 2
    inv_std = lax.rsqrt(running_var + eps)
    scale = gamma * inv_std
    offset = beta + (bias - running_mean) * scale
    wq = (weight[..., 0] * scale[:, None, None]).astype(jnp.bfloat16)
    wq = wq.astype(jnp.float32)[..., None]                          # (C_out, C_in, K, 1)
    xq = x_nchw.astype(jnp.bfloat16).astype(jnp.float32)
    y = lax.conv_general_dilated(
        xq, wq, window_strides=(stride, 1),
        padding=((pad, pad), (0, 0)), rhs_dilation=(dilation, 1),
        dimension_numbers=("NCHW", "OIHW", "NCHW"))
    return y + offset[None, :, None, None]


if __name__ == "__main__":
    # Small shapes consistent with the module: NCHW = (batch, in_dim, T, V)
    N, C_in, T, V = 2, 4, 16, 16
    C_out, K, stride, dilation = 8, 7, 2, 1

    key = jax.random.PRNGKey(0)
    kx, kw, kb, kg, kbe, km, kv = jax.random.split(key, 7)

    x = jax.random.normal(kx, (N, C_in, T, V), dtype=jnp.float32)

    # Deterministic parameters (PyTorch-like uniform bounds for conv, synthetic BN stats).
    fan_in = C_in * K * 1
    bound = 1.0 / math.sqrt(fan_in)
    weight = jax.random.uniform(kw, (C_out, C_in, K, 1), minval=-bound, maxval=bound,
                                dtype=jnp.float32)
    bias = jax.random.uniform(kb, (C_out,), minval=-bound, maxval=bound, dtype=jnp.float32)
    gamma = jax.random.uniform(kg, (C_out,), minval=0.5, maxval=1.5, dtype=jnp.float32)
    beta = jax.random.uniform(kbe, (C_out,), minval=-0.1, maxval=0.1, dtype=jnp.float32)
    running_mean = 0.1 * jax.random.normal(km, (C_out,), dtype=jnp.float32)
    running_var = jax.random.uniform(kv, (C_out,), minval=0.5, maxval=1.5, dtype=jnp.float32)

    out = downsampling_temp_conv(x, weight, bias, gamma, beta, running_mean, running_var,
                                 kernel_size=K, stride=stride, dilation=dilation)
    out = jax.block_until_ready(out)

    pad = (K - 1) * dilation // 2
    T_out = (T + 2 * pad - dilation * (K - 1) - 1) // stride + 1
    assert out.shape == (N, C_out, T_out, V)

    ref = _reference(x, weight, bias, gamma, beta, running_mean, running_var,
                     stride=stride, dilation=dilation)
    ref_q = _reference_bf16(x, weight, bias, gamma, beta, running_mean, running_var,
                            stride=stride, dilation=dilation)
    jax.block_until_ready((ref, ref_q))

    err_exact = float(jnp.max(jnp.abs(out - ref_q)))   # same rounding -> should be tiny
    err_fp32 = float(jnp.max(jnp.abs(out - ref)))      # vs f32 module semantics
    assert err_exact < 1e-3, err_exact
    assert err_fp32 < 5e-2, err_fp32
    print("KERNEL_OK")
</pallas_src>

<mosaic_0001>
module attributes {stable_mosaic.version = 11 : i64} {
  func.func @_dstc_kernel(%arg0: i32, %arg1: i32, %arg2: memref<1x11x2x64xbf16, #tpu.memory_space<vmem>>, %arg3: memref<7x64x128xbf16, #tpu.memory_space<vmem>>, %arg4: memref<1x128xf32, #tpu.memory_space<vmem>>, %arg5: memref<1x8x128xf32, #tpu.memory_space<vmem>>) attributes {dimension_semantics = [#tpu.dimension_semantics<parallel>, #tpu.dimension_semantics<parallel>], iteration_bounds = array<i64: 2, 1>, scalar_prefetch = 0 : i64, scratch_operands = 0 : i64, tpu.core_type = #tpu.core_type<tc>, window_params = [{transform_indices = @transform_0, window_bounds = array<i64: 1, 11, 2, 64>}, {pipeline_mode = #tpu.pipeline_mode<synchronous>, transform_indices = @transform_1, window_bounds = array<i64: 7, 64, 128>}, {pipeline_mode = #tpu.pipeline_mode<synchronous>, transform_indices = @transform_2, window_bounds = array<i64: 1, 128>}, {transform_indices = @transform_3, window_bounds = array<i64: 1, 8, 128>}]} {
    %c8_i32 = arith.constant 8 : i32
    %0 = arith.muli %arg1, %c8_i32 : i32
    %cst = arith.constant 0.000000e+00 : f32
    %1 = vector.broadcast %cst : f32 to vector<8x128xf32>
    %c0_i32 = arith.constant 0 : i32
    %2 = arith.addi %0, %c0_i32 : i32
    %c0 = arith.constant 0 : index
    %3 = arith.index_cast %2 : i32 to index
    %c0_0 = arith.constant 0 : index
    %c0_1 = arith.constant 0 : index
    %4 = vector.load %arg2[%c0, %3, %c0_0, %c0_1] : memref<1x11x2x64xbf16, #tpu.memory_space<vmem>>, vector<1x8x1x64xbf16>
    %5 = vector.shape_cast %4 : vector<1x8x1x64xbf16> to vector<8x64xbf16>
    %c0_2 = arith.constant 0 : index
    %c0_3 = arith.constant 0 : index
    %c0_4 = arith.constant 0 : index
    %6 = vector.load %arg3[%c0_2, %c0_3, %c0_4] : memref<7x64x128xbf16, #tpu.memory_space<vmem>>, vector<1x64x128xbf16>
    %7 = vector.shape_cast %6 : vector<1x64x128xbf16> to vector<64x128xbf16>
    %cst_5 = arith.constant dense<0.000000e+00> : vector<8x128xf32>
    %8 = tpu.matmul %5, %7, %cst_5 {dimension_numbers = #tpu.dot_dimension_numbers<[1], [0], [0], [1], [0, 0, 1, 1], [], []>} : vector<8x64xbf16>, vector<64x128xbf16>, vector<8x128xf32> -> vector<8x128xf32>
    %9 = arith.addf %1, %8 : vector<8x128xf32>
    %c0_i32_6 = arith.constant 0 : i32
    %10 = arith.addi %0, %c0_i32_6 : i32
    %c0_7 = arith.constant 0 : index
    %11 = arith.index_cast %10 : i32 to index
    %c1 = arith.constant 1 : index
    %c0_8 = arith.constant 0 : index
    %12 = vector.load %arg2[%c0_7, %11, %c1, %c0_8] : memref<1x11x2x64xbf16, #tpu.memory_space<vmem>>, vector<1x8x1x64xbf16>
    %13 = vector.shape_cast %12 : vector<1x8x1x64xbf16> to vector<8x64xbf16>
    %c1_9 = arith.constant 1 : index
    %c0_10 = arith.constant 0 : index
    %c0_11 = arith.constant 0 : index
    %14 = vector.load %arg3[%c1_9, %c0_10, %c0_11] : memref<7x64x128xbf16, #tpu.memory_space<vmem>>, vector<1x64x128xbf16>
    %15 = vector.shape_cast %14 : vector<1x64x128xbf16> to vector<64x128xbf16>
    %cst_12 = arith.constant dense<0.000000e+00> : vector<8x128xf32>
    %16 = tpu.matmul %13, %15, %cst_12 {dimension_numbers = #tpu.dot_dimension_numbers<[1], [0], [0], [1], [0, 0, 1, 1], [], []>} : vector<8x64xbf16>, vector<64x128xbf16>, vector<8x128xf32> -> vector<8x128xf32>
    %17 = arith.addf %9, %16 : vector<8x128xf32>
    %c1_i32 = arith.constant 1 : i32
    %18 = arith.addi %0, %c1_i32 : i32
    %c0_13 = arith.constant 0 : index
    %19 = arith.index_cast %18 : i32 to index
    %c0_14 = arith.constant 0 : index
    %c0_15 = arith.constant 0 : index
    %20 = vector.load %arg2[%c0_13, %19, %c0_14, %c0_15] : memref<1x11x2x64xbf16, #tpu.memory_space<vmem>>, vector<1x8x1x64xbf16>
    %21 = vector.shape_cast %20 : vector<1x8x1x64xbf16> to vector<8x64xbf16>
    %c2 = arith.constant 2 : index
    %c0_16 = arith.constant 0 : index
    %c0_17 = arith.constant 0 : index
    %22 = vector.load %arg3[%c2, %c0_16, %c0_17] : memref<7x64x128xbf16, #tpu.memory_space<vmem>>, vector<1x64x128xbf16>
    %23 = vector.shape_cast %22 : vector<1x64x128xbf16> to vector<64x128xbf16>
    %cst_18 = arith.constant dense<0.000000e+00> : vector<8x128xf32>
    %24 = tpu.matmul %21, %23, %cst_18 {dimension_numbers = #tpu.dot_dimension_numbers<[1], [0], [0], [1], [0, 0, 1, 1], [], []>} : vector<8x64xbf16>, vector<64x128xbf16>, vector<8x128xf32> -> vector<8x128xf32>
    %25 = arith.addf %17, %24 : vector<8x128xf32>
    %c1_i32_19 = arith.constant 1 : i32
    %26 = arith.addi %0, %c1_i32_19 : i32
    %c0_20 = arith.constant 0 : index
    %27 = arith.index_cast %26 : i32 to index
    %c1_21 = arith.constant 1 : index
    %c0_22 = arith.constant 0 : index
    %28 = vector.load %arg2[%c0_20, %27, %c1_21, %c0_22] : memref<1x11x2x64xbf16, #tpu.memory_space<vmem>>, vector<1x8x1x64xbf16>
    %29 = vector.shape_cast %28 : vector<1x8x1x64xbf16> to vector<8x64xbf16>
    %c3 = arith.constant 3 : index
    %c0_23 = arith.constant 0 : index
    %c0_24 = arith.constant 0 : index
    %30 = vector.load %arg3[%c3, %c0_23, %c0_24] : memref<7x64x128xbf16, #tpu.memory_space<vmem>>, vector<1x64x128xbf16>
    %31 = vector.shape_cast %30 : vector<1x64x128xbf16> to vector<64x128xbf16>
    %cst_25 = arith.constant dense<0.000000e+00> : vector<8x128xf32>
    %32 = tpu.matmul %29, %31, %cst_25 {dimension_numbers = #tpu.dot_dimension_numbers<[1], [0], [0], [1], [0, 0, 1, 1], [], []>} : vector<8x64xbf16>, vector<64x128xbf16>, vector<8x128xf32> -> vector<8x128xf32>
    %33 = arith.addf %25, %32 : vector<8x128xf32>
    %c2_i32 = arith.constant 2 : i32
    %34 = arith.addi %0, %c2_i32 : i32
    %c0_26 = arith.constant 0 : index
    %35 = arith.index_cast %34 : i32 to index
    %c0_27 = arith.constant 0 : index
    %c0_28 = arith.constant 0 : index
    %36 = vector.load %arg2[%c0_26, %35, %c0_27, %c0_28] : memref<1x11x2x64xbf16, #tpu.memory_space<vmem>>, vector<1x8x1x64xbf16>
    %37 = vector.shape_cast %36 : vector<1x8x1x64xbf16> to vector<8x64xbf16>
    %c4 = arith.constant 4 : index
    %c0_29 = arith.constant 0 : index
    %c0_30 = arith.constant 0 : index
    %38 = vector.load %arg3[%c4, %c0_29, %c0_30] : memref<7x64x128xbf16, #tpu.memory_space<vmem>>, vector<1x64x128xbf16>
    %39 = vector.shape_cast %38 : vector<1x64x128xbf16> to vector<64x128xbf16>
    %cst_31 = arith.constant dense<0.000000e+00> : vector<8x128xf32>
    %40 = tpu.matmul %37, %39, %cst_31 {dimension_numbers = #tpu.dot_dimension_numbers<[1], [0], [0], [1], [0, 0, 1, 1], [], []>} : vector<8x64xbf16>, vector<64x128xbf16>, vector<8x128xf32> -> vector<8x128xf32>
    %41 = arith.addf %33, %40 : vector<8x128xf32>
    %c2_i32_32 = arith.constant 2 : i32
    %42 = arith.addi %0, %c2_i32_32 : i32
    %c0_33 = arith.constant 0 : index
    %43 = arith.index_cast %42 : i32 to index
    %c1_34 = arith.constant 1 : index
    %c0_35 = arith.constant 0 : index
    %44 = vector.load %arg2[%c0_33, %43, %c1_34, %c0_35] : memref<1x11x2x64xbf16, #tpu.memory_space<vmem>>, vector<1x8x1x64xbf16>
    %45 = vector.shape_cast %44 : vector<1x8x1x64xbf16> to vector<8x64xbf16>
    %c5 = arith.constant 5 : index
    %c0_36 = arith.constant 0 : index
    %c0_37 = arith.constant 0 : index
    %46 = vector.load %arg3[%c5, %c0_36, %c0_37] : memref<7x64x128xbf16, #tpu.memory_space<vmem>>, vector<1x64x128xbf16>
    %47 = vector.shape_cast %46 : vector<1x64x128xbf16> to vector<64x128xbf16>
    %cst_38 = arith.constant dense<0.000000e+00> : vector<8x128xf32>
    %48 = tpu.matmul %45, %47, %cst_38 {dimension_numbers = #tpu.dot_dimension_numbers<[1], [0], [0], [1], [0, 0, 1, 1], [], []>} : vector<8x64xbf16>, vector<64x128xbf16>, vector<8x128xf32> -> vector<8x128xf32>
    %49 = arith.addf %41, %48 : vector<8x128xf32>
    %c3_i32 = arith.constant 3 : i32
    %50 = arith.addi %0, %c3_i32 : i32
    %c0_39 = arith.constant 0 : index
    %51 = arith.index_cast %50 : i32 to index
    %c0_40 = arith.constant 0 : index
    %c0_41 = arith.constant 0 : index
    %52 = vector.load %arg2[%c0_39, %51, %c0_40, %c0_41] : memref<1x11x2x64xbf16, #tpu.memory_space<vmem>>, vector<1x8x1x64xbf16>
    %53 = vector.shape_cast %52 : vector<1x8x1x64xbf16> to vector<8x64xbf16>
    %c6 = arith.constant 6 : index
    %c0_42 = arith.constant 0 : index
    %c0_43 = arith.constant 0 : index
    %54 = vector.load %arg3[%c6, %c0_42, %c0_43] : memref<7x64x128xbf16, #tpu.memory_space<vmem>>, vector<1x64x128xbf16>
    %55 = vector.shape_cast %54 : vector<1x64x128xbf16> to vector<64x128xbf16>
    %cst_44 = arith.constant dense<0.000000e+00> : vector<8x128xf32>
    %56 = tpu.matmul %53, %55, %cst_44 {dimension_numbers = #tpu.dot_dimension_numbers<[1], [0], [0], [1], [0, 0, 1, 1], [], []>} : vector<8x64xbf16>, vector<64x128xbf16>, vector<8x128xf32> -> vector<8x128xf32>
    %57 = arith.addf %49, %56 : vector<8x128xf32>
    %c0_45 = arith.constant 0 : index
    %c0_46 = arith.constant 0 : index
    %58 = vector.load %arg4[%c0_45, %c0_46] : memref<1x128xf32, #tpu.memory_space<vmem>>, vector<1x128xf32>
    %59 = vector.shape_cast %58 : vector<1x128xf32> to vector<128xf32>
    %60 = vector.shape_cast %59 : vector<128xf32> to vector<1x128xf32>
    %61 = vector.broadcast %60 : vector<1x128xf32> to vector<8x128xf32>
    %62 = arith.addf %57, %61 : vector<8x128xf32>
    %c0_47 = arith.constant 0 : index
    %c0_48 = arith.constant 0 : index
    %c0_49 = arith.constant 0 : index
    %63 = vector.load %arg5[%c0_47, %c0_48, %c0_49] : memref<1x8x128xf32, #tpu.memory_space<vmem>>, vector<1x8x128xf32>
    %64 = vector.shape_cast %63 : vector<1x8x128xf32> to vector<8x128xf32>
    %65 = vector.shape_cast %62 : vector<8x128xf32> to vector<1x8x128xf32>
    tpu.vector_store %arg5[%c0_47, %c0_48, %c0_49], %65 {strides = array<i32>} : memref<1x8x128xf32, #tpu.memory_space<vmem>>, vector<1x8x128xf32>,
    return
  }
  func.func @transform_0(%arg0: i32, %arg1: i32) -> (i32, i32, i32, i32) {
    %c0_i32 = arith.constant 0 : i32
    %c0_i32_0 = arith.constant 0 : i32
    %c0_i32_1 = arith.constant 0 : i32
    %c0_i32_2 = arith.constant 0 : i32
    return %arg0, %c0_i32, %c0_i32_0, %c0_i32_1 : i32, i32, i32, i32
  }
  func.func @transform_1(%arg0: i32, %arg1: i32) -> (i32, i32, i32) {
    %c0_i32 = arith.constant 0 : i32
    %c0_i32_0 = arith.constant 0 : i32
    %c0_i32_1 = arith.constant 0 : i32
    %c0_i32_2 = arith.constant 0 : i32
    return %c0_i32, %c0_i32_0, %c0_i32_1 : i32, i32, i32
  }
  func.func @transform_2(%arg0: i32, %arg1: i32) -> (i32, i32) {
    %c0_i32 = arith.constant 0 : i32
    %c0_i32_0 = arith.constant 0 : i32
    %c0_i32_1 = arith.constant 0 : i32
    return %c0_i32, %c0_i32_0 : i32, i32
  }
  func.func @transform_3(%arg0: i32, %arg1: i32) -> (i32, i32, i32) {
    %c0_i32 = arith.constant 0 : i32
    %c0_i32_0 = arith.constant 0 : i32
    return %arg0, %arg1, %c0_i32 : i32, i32, i32
  }
}

</mosaic_0001>

<bundles_post_ra>
// kernel: tpu_custom_call.1
= control target key start
LH: loop header
LB: loop body
LE: loop exit
PB: predicated region body
PF: predicated region fallthrough
CT: control target
= control target key end

     0   :  { %8 = vsyncpa [#allocation3], 0  ;;  %s2747_s0 = inlined_call_operand.hbm [shape: bf16[2,11,2,64], index: 0, kind: input, shape index: {}]   ;;  %s2748_s1 = inlined_call_operand.hbm [shape: bf16[7,64,128], index: 1, kind: input, shape index: {}]   ;;  %s2749_s2 = inlined_call_operand.vmem [shape: f32[1,128], index: 2, kind: input, shape index: {}]   ;;  %s2750_s3 = inlined_call_operand.hbm [shape: f32[2,8,128], index: 3, kind: output, shape index: {}]  }
   0x1   :  { %10 = vsyncpa [#allocation3 + $0x1], 0 }
   0x2   :  { %11 = vsyncpa [#allocation6], 0 }
   0x3   :  { %12 = vsyncpa [#allocation4], 0 }
   0x4   :  { %14 = vsyncpa [#allocation4 + $0x1], 0  ;;  %s2359_s12 = smov 0   ;;  %s2361_s13 = smov 0  }
   0x5   :  { %s2363_s14 = smov 0   ;;  %s2365_s15 = smov 0  }
   0x6   :  { %s2367_s16 = smov 0   ;;  %s2369_s17 = smov 0  }
   0x7 LB: > { %s1816_s18 = sadd.s32 4294967295, %s2327_s17   ;;  %s1817_s19 = sadd.s32 4294967294, %s2327_s17   ;;  %s2327_s17 = sphi %s2369_s17, %s20_s17   ;;  %s2323_s16 = sphi %s2367_s16, %s2773_s16   ;;  %s2319_s15 = sphi %s2365_s15, %s2772_s15   ;;  %s2315_s14 = sphi %s2363_s14, %s2771_s14   ;;  %s2311_s13 = sphi %s2361_s13, %s2770_s13   ;;  %s2307_s12 = sphi %s2359_s12, %s2769_s12  }
   0x8   : > { %p52_p0 = scmp.ne.s32.totalorder %s2311_s13, %s2307_s12  ;;  %p2393_p1 = scmp.eq.s32.totalorder %s1816_s18, 0 }
   0x9   : > { %p2397_p2 = scmp.eq.s32.totalorder %s1816_s18, 1  ;;  %p126_p3 = scmp.eq.s32.totalorder %s1817_s19, 1 }
   0xa   : > { %s2755_s20 = scalar_select %p2393_p1, 1, 0 }
   0xb   : > { %s2756_s21 = scalar_select %p2397_p2, 1, 0 }
   0xc   : > { %p2403_p4 = por %p2393_p1, %p52_p0  ;;  %p1818_p5 = scmp.ge.s32.totalorder %s2327_s17, 1 }
   0xd   : > { %p2408_p6 = por %p126_p3, %p52_p0  ;;  %p133_p7 = scmp.lt.s32.totalorder %s2327_s17, 3 }
   0xe   : > { %s2757_s22 = scalar_select %p2403_p4, 1, 0 }
   0xf   : > { %s2758_s23 = scalar_select %p2408_p6, 1, 0 }
  0x10   : > { %p2413_p8 = pnand %p1818_p5, %p133_p7  ;;  %s2329_s25 = smov [#allocation5]  }
  0x11   : > { %s145_s26 = sshll.u32 %s2329_s25, 4  ;;  %s32_s28 = sadd.s32 1, %s2323_s16  ;;  %s146_s26 = int_to_ptr.vmem [resolvable:$true] %s145_s26 }
  0x12   : > { %s2759_s24 = scalar_select %p2413_p8, 1, 0 }
  0x13   : > { %p2083_p9 = pneg %p2413_p8  ;;  %s2183_s4 = scalar_lea.hbm %s2748_s1, 3584 }
  0x14   : > { %p2184_p12 = scmp.ne.s32.totalorder %s2748_s1, %s2183_s4  ;;  %p2190_p5 = scmp.lt.u32.totalorder %s2183_s4, %s2748_s1 }
  0x15   : > { %p2422_p11 = pnand %p2083_p9, %p2393_p1 }
  0x17   : > { %p2185_p13 = pneg %p2422_p11 }
  0x19   : > { %p2186_p0 = pnand %p2185_p13, %p2184_p12 }
  0x1b   : > { %p2187_p3 = pneg %p2186_p0 }
  0x1d   : > { %p2192_p7 = pnand %p2190_p5, %p2187_p3 }
  0x1f   : > { %2195 = shalt.err (!%p2192_p7)
}
  0x20   : > { %s2196_s9 = scalar_lea.vmem %s146_s26, 3584  ;;  %p2204_p1 = scmp.lt.s32.totalorder %s146_s26, %s146_s26 }
  0x21   : > { %p2197_p9 = scmp.ne.s32.totalorder %s146_s26, %s2196_s9  ;;  %p2205_p4 = scmp.lt.s32.totalorder %s2196_s9, %s2196_s9 }
  0x23   : > { %p2199_p10 = pnand %p2197_p9, %p2185_p13  ;;  %p2206_p8 = por %p2205_p4, %p2204_p1 }
  0x25   : > { %p2200_p6 = pneg %p2199_p10 }
  0x27   : > { %p2207_p2 = pnand %p2206_p8, %p2200_p6 }
  0x29   : > { %2210 = shalt.err (!%p2207_p2)
}
  0x2a   : > { %s2330_s10 = smov 64   ;;  %s2331_s11 = smov 4  }
  0x2b   : > { %2086 = dma.hbm_to_vmem [thread:$0]  (!%p2422_p11), %s2748_s1, 3584, %s146_s26, [#allocation6], %s2330_s10, %s2330_s10, %s2331_s11  }
  0x2c   : > { %p34_p1 = scmp.ge.s32.totalorder %s32_s28, 2  ;;  %s39_s25 = sadd.s32 1, %s2315_s14 }
  0x2d   : > { %p46_p2 = scmp.ne.s32.totalorder %s2315_s14, %s2311_s13  ;;  %p47_p4 = scmp.eq.s32.totalorder %s2327_s17, 0 }
  0x2e   : > { %s2775_s28 = smov (%p34_p1, %s32_s28), 0  ;;  %p2761_p8 = scmp.ne.s32.totalorder %s2756_s21, 0 }
  0x2f   : > { %p48_p6 = por %p47_p4, %p46_p2  ;;  %s36_s30 = ssub.s32 %s2323_s16, %s2775_s28 }
  0x30   : > { %p2451_p10 = por %p2761_p8, %p46_p2  ;;  %p2096_p12 = scmp.lt.s32.totalorder %s2327_s17, 2 }
  0x31   : > { %p37_p13 = scmp.eq.s32.totalorder %s36_s30, 0  ;;  %s162_s27 = sand.u32 1, %s2315_s14  }
  0x32   : > { %s2072_s4 = smul.u32 11, %s162_s27  ;;  %p2463_p11 = pnand %p2096_p12, %p48_p6 }
  0x33   : > { %s2460_s5 = scalar_select %p37_p13, %s2315_s14, %s39_s25  }
  0x34   : > { %s2073_s26 = smul.u32 176, %s2323_s16  ;;  %s166_s6 = scalar_lea.vmem [#allocation2], %s2072_s4 }
  0x35   : > { %s173_s7 = sshll.u32 %s166_s6, 4  ;;  %s2474_s11 = scalar_lea.sflag [#allocation3], %s162_s27  ;;  %s2472_s7 = int_to_ptr.vmem [resolvable:$true] %s173_s7 }
  0x36   : > { %s2470_s10 = scalar_lea.hbm %s2747_s0, %s2073_s26  ;;  %p2213_p3 = pneg %p2463_p11 }
  0x37   : > { %s2211_s18 = scalar_lea.hbm %s2470_s10, 176  ;;  %s2216_s30 = scalar_lea.hbm %s2747_s0, 352 }
  0x38   : > { %p2212_p0 = scmp.ne.s32.totalorder %s2470_s10, %s2211_s18  ;;  %p2217_p9 = scmp.lt.u32.totalorder %s2470_s10, %s2747_s0 }
  0x39   : > { %p2218_p1 = scmp.lt.u32.totalorder %s2216_s30, %s2211_s18  ;;  %p2220_p4 = scmp.lt.u32.totalorder %s2211_s18, %s2470_s10 }
  0x3a   : > { %p2214_p5 = pnand %p2213_p3, %p2212_p0 }
  0x3b   : > { %p2219_p2 = por %p2218_p1, %p2217_p9 }
  0x3c   : > { %p2215_p7 = pneg %p2214_p5 }
  0x3d   : > { %p2221_p6 = por %p2220_p4, %p2219_p2 }
  0x3f   : > { %p2222_p8 = pnand %p2221_p6, %p2215_p7 }
  0x41   : > { %2225 = shalt.err (!%p2222_p8)
}
  0x42   : > { %s2226_s27 = scalar_lea.vmem %s2472_s7, 176  ;;  %s2332_s6 = smov [#allocation2]  }
  0x43   : > { %p2227_p12 = scmp.ne.s32.totalorder %s2472_s7, %s2226_s27  ;;  %s2231_s9 = sshll.u32 %s2332_s6, 4  ;;  %s2232_s9 = int_to_ptr.vmem [resolvable:$false] %s2231_s9 }
  0x44   : > { %s2233_s21 = scalar_lea.vmem %s2232_s9, 352  ;;  %p2234_p5 = scmp.lt.s32.totalorder %s2472_s7, %s2232_s9 }
  0x45   : > { %p2229_p13 = pnand %p2227_p12, %p2213_p3  ;;  %p2235_p9 = scmp.lt.s32.totalorder %s2233_s21, %s2226_s27 }
  0x47   : > { %p2230_p0 = pneg %p2229_p13  ;;  %p2236_p1 = por %p2235_p9, %p2234_p5 }
  0x49   : > { %p2237_p2 = pnand %p2236_p1, %p2230_p0 }
  0x4b   : > { %2240 = shalt.err (!%p2237_p2)
}
  0x4c   : > { %s2333_s18 = smov 16   ;;  %s2334_s19 = smov 1  }
  0x4d   : > { %2090 = dma.hbm_to_vmem [thread:$0]  (!%p2463_p11), %s2470_s10, 176, %s2472_s7, %s2474_s11, %s2333_s18, %s2333_s18, %s2334_s19  }
  0x4e   : > { %p2764_p3 = scmp.ne.s32.totalorder %s2759_s24, 0 }
  0x4f   : > { %s2505_s25 = sand.u32 (!%p2764_p3), 1, %s2311_s13   ;;  %p2765_p7 = scmp.ne.s32.totalorder (!%p2764_p3), %s2757_s22, 0 }
  0x50   : > { %185 = sbr.rel (%p2764_p3) target bundleno = 391 (0x187), region = 32  ;;  %s188_s4 = scalar_lea.sflag (!%p2764_p3), [#allocation3], %s2505_s25 }
  0x51   : > { %s2074_s30 = smul.u32 (!%p2764_p3), 11, %s2505_s25 }
  0x53   : > { %s2509_s26 = scalar_lea.vmem (!%p2764_p3), [#allocation2], %s2074_s30 }
  0x57   : > { %2294 = dma.done.wait (%p2765_p7), %s188_s4, 176  }
  0x58   : > { %2296 = vsyncadd (%p2765_p7), %s188_s4, 4294967120  ;;  %p2766_p11 = scmp.ne.s32.totalorder %s2755_s20, 0 }
  0x5a   : > { %2298 = dma.done.wait (%p2766_p11), [#allocation6], 3584  }
  0x5b   : > { %2300 = vsyncadd (%p2766_p11), [#allocation6], 4294963712  ;;  %v2335_v0 = vmov 0.0   ;;  %vm2336_vm0 = vmmov 0   ;;  %v2337_v1 = vmov 1966171168   ;;  %v264_v3 = vlaneseq }
  0x5c   : > { %1988 = vmatprep.subr.bf16.mxu0 %v2335_v0  ;;  %2000 = vmatprep.subr.bf16.mxu1 %v2335_v0  ;;  %v262_v2 = vunpack.c.l.s4 %v2337_v1  ;;  %v2155_v4 = vld [vmem:[#allocation5 + $0x20] sm:$0xff]   ;;  %v2157_v8 = vld [vmem:[#allocation5 + $0x28] sm:$0xff]   ;;  %vm375_vm1 = vcmask 1041409   ;;  %v2159_v11 = vld [vmem:[#allocation5 + $0x30] sm:$0xff]   ;;  %vm378_vm2 = vcmask 1042434   ;;  %vm381_vm3 = vcmask 1043459  }
  0x5d   : > { %1996 = vmatprep.mubr.msk.bf16.mxu0 %vm2336_vm0, %v2335_v0  ;;  %2008 = vmatprep.mubr.msk.bf16.mxu1 %vm2336_vm0, %v2335_v0  ;;  %v2156_v5 = vld [vmem:[#allocation5] sm:$0xff]   ;;  %v265_v7 = vshrl.u32 %v264_v3, 7  ;;  %v2158_v9 = vld [vmem:[#allocation5 + $0x8] sm:$0xff]   ;;  %v2160_v12 = vld [vmem:[#allocation5 + $0x10] sm:$0xff]   ;;  %vm384_vm4 = vcmask 1044484   ;;  %vm387_vm5 = vcmask 1045509  }
  0x5e   : > { %v263_v6 = vunpack.c.0.s8 %v262_v2  ;;  %1989 = vmatpush3.bf16.msra.mxu0 %v2155_v4  ;;  %2001 = vmatpush3.bf16.msra.mxu1 %v2156_v5  ;;  %v1825_v13 = vld.sshfl [vmem:[%s2509_s26] sm:$0x1 pattern:$0x75316420]  ;;  %v2161_v16 = vld [vmem:[#allocation5 + $0x38] sm:$0xff]   ;;  %vm390_vm6 = vcmask 1046534  }
  0x5f   : > { %1990 = vmatprep.subr.bf16.mxu0 %v2335_v0  ;;  %2002 = vmatprep.subr.bf16.mxu1 %v2335_v0  ;;  %v1826_v14 = vld.sshfl [vmem:[%s2509_s26 + $0x1] sm:$0x1 pattern:$0x75316420]  ;;  %v2162_v17 = vld [vmem:[#allocation5 + $0x18] sm:$0xff]   ;;  %vm393_vm7 = vcmask 1047559  }
  0x60   : > { %v2527_v10 = vsub.s32 %v263_v6, %v265_v7  ;;  %v1827_v18 = vld.sshfl [vmem:[%s2509_s26 + $0x2] sm:$0x1 pattern:$0x75316420]  ;;  %vm420_vm8 = vcmask 523264   ;;  %v2163_v63 = vld [vmem:[#allocation5 + $0x40] sm:$0xff]  }
  0x61   : > { %v1828_v20 = vld.sshfl [vmem:[%s2509_s26 + $0x3] sm:$0x1 pattern:$0x75316420]  ;;  %v2164_v7 = vld [vmem:[#allocation5 + $0x60] sm:$0xff]   ;;  %s1824_s20 = sshll.u32 %s2505_s25, 3 }
  0x62   : > { %1991 = vmatpush3.bf16.msra.mxu0 %v2157_v8  ;;  %2003 = vmatpush3.bf16.msra.mxu1 %v2158_v9  ;;  %v267_v15 = vrot.slane %v1825_v13, %v2527_v10  ;;  %v281_v19 = vrot.slane %v1826_v14, %v2527_v10  ;;  %v295_v21 = vrot.slane %v1827_v18, %v2527_v10  ;;  %v1829_v23 = vld.sshfl [vmem:[%s2509_s26 + $0x4] sm:$0x1 pattern:$0x75316420]  ;;  %s1950_s7 = sshll.u32 %s2319_s15, 7  ;;  %s217_s8 = scalar_lea.vmem [#allocation7], %s1824_s20 }
  0x63   : > { %1992 = vmatprep.subr.bf16.mxu0 %v2335_v0  ;;  %2004 = vmatprep.subr.bf16.mxu1 %v2335_v0  ;;  %v309_v24 = vrot.slane %v1828_v20, %v2527_v10  ;;  %v1830_v26 = vld.sshfl [vmem:[%s2509_s26 + $0x5] sm:$0x1 pattern:$0x75316420]  ;;  %v323_v27 = vrot.slane %v1829_v23, %v2527_v10  ;;  %s1716_s10 = sshll.u32 %s217_s8, 4  ;;  %s2698_s6 = scalar_lea.hbm %s2750_s3, %s1950_s7  ;;  %s2700_s10 = int_to_ptr.vmem [resolvable:$true] %s1716_s10 }
  0x64   : > { %v366_v22 = vunpack.c.l.b16 %v267_v15  ;;  %v2542_v25 = vunpack.c.l.b16 %v281_v19  ;;  %v2546_v28 = vunpack.c.l.b16 %v295_v21  ;;  %v1831_v30 = vld.sshfl [vmem:[%s2509_s26 + $0x6] sm:$0x1 pattern:$0x75316420]  ;;  %v337_v31 = vrot.slane %v1830_v26, %v2527_v10  ;;  %v2165_v18 = vld [vmem:[#allocation5 + $0x48] sm:$0xff]   ;;  %s1702_s9 = scalar_lea.sflag [#allocation4], %s2505_s25 }
  0x65   : > { %v2550_v32 = vunpack.c.l.b16 %v309_v24  ;;  %v1832_v34 = vld.sshfl [vmem:[%s2509_s26 + $0x7] sm:$0x1 pattern:$0x75316420]  ;;  %v351_v35 = vrot.slane %v1831_v30, %v2527_v10  ;;  %v2555_v36 = vunpack.c.l.b16 %v323_v27  ;;  %v2166_v24 = vld [vmem:[#allocation5 + $0x68] sm:$0xff]   ;;  %s2241_s15 = scalar_lea.vmem %s2700_s10, 128 }
  0x66   : > { %1993 = vmatpush3.bf16.msra.mxu0 %v2159_v11  ;;  %2005 = vmatpush3.bf16.msra.mxu1 %v2160_v12  ;;  %v374_v29 = vrot.slane %v366_v22, 1  ;;  %v464_v33 = vrot.slane %v2542_v25, 7  ;;  %v377_v38 = vrot.slane %v2546_v28, 7  ;;  %v365_v39 = vrot.slane %v1832_v34, %v2527_v10  ;;  %v2167_v30 = vld [vmem:[#allocation5 + $0x50] sm:$0xff]   ;;  %p2242_p4 = scmp.ne.s32.totalorder %s2700_s10, %s2241_s15  ;;  %s2338_s21 = smov [#allocation7]  }
  0x67   : > { %1994 = vmatprep.subr.bf16.mxu0 %v2335_v0  ;;  %2006 = vmatprep.subr.bf16.mxu1 %v2335_v0  ;;  %v2562_v40 = vunpack.c.l.b16 %v337_v31  ;;  %v380_v41 = vrot.slane %v2550_v32, 6  ;;  %v2567_v43 = vunpack.c.l.b16 %v351_v35  ;;  %v383_v45 = vrot.slane %v2555_v36, 5  ;;  %v1858_v3 = vld.sshfl [vmem:[%s2509_s26 + $0x8] sm:$0x1 pattern:$0x75316420] }
  0x68   : > { %v376_v37 = vsel %vm375_vm1, %v2542_v25, %v374_v29  ;;  %v465_v42 = vsel %vm375_vm1, %v464_v33, %v366_v22  ;;  %v466_v46 = vrot.slane %v2546_v28, 6  ;;  %v2572_v47 = vunpack.c.l.b16 %v365_v39  ;;  %v2168_v35 = vld [vmem:[#allocation5 + $0x70] sm:$0xff]   ;;  %p2243_p6 = pnand %p2242_p4, %p2451_p10  ;;  %s2245_s18 = sshll.u32 %s2338_s21, 4  ;;  %s2246_s18 = int_to_ptr.vmem [resolvable:$false] %s2245_s18 }
  0x69   : > { %v379_v44 = vsel %vm378_vm2, %v377_v38, %v376_v37  ;;  %v386_v49 = vrot.slane %v2562_v40, 4  ;;  %v468_v50 = vrot.slane %v2550_v32, 5  ;;  %v389_v52 = vrot.slane %v2567_v43, 3  ;;  %s2247_s19 = scalar_lea.vmem %s2246_s18, 256  ;;  %p2248_p12 = scmp.lt.s32.totalorder %s2700_s10, %s2246_s18 }
  0x6a   : > { %1995 = vmatpush3.bf16.msra.mxu0 %v2161_v16  ;;  %2007 = vmatpush3.bf16.msra.mxu1 %v2162_v17  ;;  %v382_v48 = vsel %vm381_vm3, %v380_v41, %v379_v44  ;;  %v467_v53 = vsel %vm378_vm2, %v466_v46, %v465_v42  ;;  %v470_v54 = vrot.slane %v2555_v36, 4  ;;  %v392_v56 = vrot.slane %v2572_v47, 2  ;;  %v2169_v44 = vld [vmem:[#allocation5 + $0x58] sm:$0xff]   ;;  %p2244_p8 = pneg %p2243_p6  ;;  %p2249_p13 = scmp.lt.s32.totalorder %s2247_s19, %s2241_s15 }
  0x6b   : > { %2012 = vmatprep.subr.bf16.mxu0 %v2335_v0  ;;  %2024 = vmatprep.subr.bf16.mxu1 %v2335_v0  ;;  %v385_v51 = vsel %vm384_vm4, %v383_v45, %v382_v48  ;;  %v469_v57 = vsel %vm381_vm3, %v468_v50, %v467_v53  ;;  %v472_v58 = vrot.slane %v2562_v40, 3  ;;  %v474_v61 = vrot.slane %v2567_v43, 2  ;;  %v2170_v50 = vld [vmem:[#allocation5 + $0x78] sm:$0xff]  }
  0x6c   : > { %v388_v55 = vsel %vm387_vm5, %v386_v49, %v385_v51  ;;  %v471_v60 = vsel %vm384_vm4, %v470_v54, %v469_v57  ;;  %v476_v62 = vrot.slane %v2572_v47, 1  ;;  %v694_v4 = vsel %vm375_vm1, %v377_v38, %v2542_v25  ;;  %p2250_p0 = por %p2249_p13, %p2248_p12 }
  0x6d   : > { %v391_v59 = vsel %vm390_vm6, %v389_v52, %v388_v55  ;;  %v473_v2 = vsel %vm387_vm5, %v472_v58, %v471_v60  ;;  %v684_v8 = vrot.slane %v1858_v3, %v2527_v10  ;;  %v696_v9 = vsel %vm378_vm2, %v380_v41, %v694_v4  ;;  %v1900_v41 = vld.sshfl [vmem:[%s2509_s26 + $0x9] sm:$0x1 pattern:$0x75316420]  ;;  %v2172_v58 = vld [vmem:[#allocation5 + $0xa0] sm:$0xff]   ;;  %v2173_v60 = vld [vmem:[#allocation5 + $0x88] sm:$0xff]  }
  0x6e   : > { %v394_v1 = vsel %vm393_vm7, %v392_v56, %v391_v59  ;;  %v475_v6 = vsel %vm390_vm6, %v474_v61, %v473_v2  ;;  %v698_v12 = vsel %vm381_vm3, %v383_v45, %v696_v9  ;;  %v921_v13 = vrot.slane %v2542_v25, 1  ;;  %p2251_p5 = pnand %p2250_p0, %p2244_p8 }
  0x6f   : > { %v395_v5 = vpack.c.b16 %v394_v1, %v394_v1  ;;  %v477_v11 = vsel %vm393_vm7, %v476_v62, %v475_v6  ;;  %v923_v14 = vrot.slane %v2550_v32, 7  ;;  %v700_v16 = vsel %vm384_vm4, %v386_v49, %v698_v12  ;;  %v2176_v6 = vld [vmem:[#allocation5 + $0xb0] sm:$0xff]  }
  0x70   : > { %v478_v15 = vpack.c.b16 %v477_v11, %v477_v11  ;;  %v925_v17 = vrot.slane %v2555_v36, 6  ;;  %v2606_v19 = vunpack.c.l.b16 %v684_v8  ;;  %v922_v20 = vsel %vm375_vm1, %v2546_v28, %v921_v13  ;;  %v2177_v11 = vld [vmem:[#allocation5 + $0x98] sm:$0xff]  }
  0x71   : > { %1997 = vmatmul.mubr.msk.bf16.vlgmr.msra.gmra.mrb[0].mxu0 %vm420_vm8, %v395_v5  ;;  %v927_v21 = vrot.slane %v2562_v40, 5  ;;  %v929_v22 = vrot.slane %v2567_v43, 4  ;;  %v924_v23 = vsel %vm378_vm2, %v923_v14, %v922_v20  ;;  %v702_v25 = vsel %vm387_vm5, %v389_v52, %v700_v16  ;;  %v1942_v13 = vld.sshfl [vmem:[%s2509_s26 + $0xa] sm:$0x1 pattern:$0x75316420] }
  0x72   : > { %2013 = vmatpush3.bf16.msra.mxu0 %v2163_v63  ;;  %2020 = vmatprep.mubr.msk.bf16.mxu0 %vm2336_vm0, %v2335_v0  ;;  %v926_v26 = vsel %vm381_vm3, %v925_v17, %v924_v23  ;;  %v931_v29 = vrot.slane %v2572_v47, 3  ;;  %v705_v31 = vrot.slane %v2606_v19, 1  ;;  %v704_v34 = vsel %vm390_vm6, %v392_v56, %v702_v25  ;;  %v2174_v63 = vld [vmem:[#allocation5 + $0xa8] sm:$0xff]  }
  0x73   : > { %2009 = vmatmul.mubr.msk.bf16.vlgmr.msra.gmra.mrb[0].mxu1 %vm420_vm8, %v478_v15  ;;  %2014 = vmatprep.subr.bf16.mxu0 %v2335_v0  ;;  %v928_v27 = vsel %vm384_vm4, %v927_v21, %v926_v26  ;;  %v933_v37 = vrot.slane %v2606_v19, 2  ;;  %v1152_v38 = vsel %vm375_vm1, %v923_v14, %v2546_v28  ;;  %v1379_v42 = vrot.slane %v2546_v28, 1  ;;  %v2178_v15 = vld [vmem:[#allocation5 + $0xb8] sm:$0xff]  }
  0x74   : > { %2025 = vmatpush3.bf16.msra.mxu1 %v2164_v7  ;;  %2032 = vmatprep.mubr.msk.bf16.mxu1 %vm2336_vm0, %v2335_v0  ;;  %v930_v33 = vsel %vm387_vm5, %v929_v22, %v928_v27  ;;  %v706_v45 = vsel %vm393_vm7, %v705_v31, %v704_v34  ;;  %v1381_v46 = vrot.slane %v2555_v36, 7  ;;  %v1154_v48 = vsel %vm378_vm2, %v925_v17, %v1152_v38  ;;  %v2171_v36 = vld [vmem:[#allocation5 + $0x80] sm:$0xff]   ;;  %v2182_v27 = vld [vmem:[#allocation5 + $0xd8] sm:$0xff]  }
  0x75   : > { %2026 = vmatprep.subr.bf16.mxu1 %v2335_v0  ;;  %v932_v39 = vsel %vm390_vm6, %v931_v29, %v930_v33  ;;  %v1380_v49 = vsel %vm375_vm1, %v2550_v32, %v1379_v42  ;;  %v1383_v52 = vrot.slane %v2562_v40, 6  ;;  %v707_v28 = vpack.c.b16 %v706_v45, %v706_v45  ;;  %v2179_v17 = vld [vmem:[#allocation5 + $0xc0] sm:$0xff]  }
  0x76   : > { %2015 = vmatpush3.bf16.msra.mxu0 %v2165_v18  ;;  %v934_v51 = vsel %vm393_vm7, %v933_v37, %v932_v39  ;;  %v1382_v53 = vsel %vm378_vm2, %v1381_v46, %v1380_v49  ;;  %v1142_v54 = vrot.slane %v1900_v41, %v2527_v10  ;;  %v1156_v55 = vsel %vm381_vm3, %v927_v21, %v1154_v48 }
  0x77   : > { %2016 = vmatprep.subr.bf16.mxu0 %v2335_v0  ;;  %v935_v56 = vpack.c.b16 %v934_v51, %v934_v51  ;;  %v1385_v57 = vrot.slane %v2567_v43, 5  ;;  %v1384_v40 = vsel %vm381_vm3, %v1383_v52, %v1382_v53  ;;  %v1158_v59 = vsel %vm384_vm4, %v929_v22, %v1156_v55  ;;  %v2180_v22 = vld [vmem:[#allocation5 + $0xc8] sm:$0xff]  }
  0x78   : > { %2027 = vmatpush3.bf16.msra.mxu1 %v2166_v24  ;;  %v1150_v61 = vunpack.c.l.b16 %v1142_v54  ;;  %v1387_v62 = vrot.slane %v2572_v47, 4  ;;  %v1160_v1 = vsel %vm387_vm5, %v931_v29, %v1158_v59  ;;  %v1389_v2 = vrot.slane %v2606_v19, 3  ;;  %v2175_v47 = vld [vmem:[#allocation5 + $0x90] sm:$0xff]  }
  0x79   : > { %2028 = vmatprep.subr.bf16.mxu1 %v2335_v0  ;;  %v1386_v43 = vsel %vm384_vm4, %v1385_v57, %v1384_v40  ;;  %v1162_v5 = vsel %vm390_vm6, %v933_v37, %v1160_v1  ;;  %v1610_v8 = vsel %vm375_vm1, %v1381_v46, %v2550_v32  ;;  %v1600_v18 = vrot.slane %v1942_v13, %v2527_v10  ;;  %v2181_v24 = vld [vmem:[#allocation5 + $0xd0] sm:$0xff]  }
  0x7a   : > { %2017 = vmatpush3.bf16.msra.mxu0 %v2167_v30  ;;  %v1163_v3 = vrot.slane %v1150_v61, 1  ;;  %v1388_v4 = vsel %vm387_vm5, %v1387_v62, %v1386_v43  ;;  %v1391_v7 = vrot.slane %v1150_v61, 2  ;;  %v1612_v14 = vsel %vm378_vm2, %v1383_v52, %v1610_v8 }
  0x7b   : > { %2018 = vmatprep.subr.bf16.mxu0 %v2335_v0  ;;  %v1390_v9 = vsel %vm390_vm6, %v1389_v2, %v1388_v4  ;;  %v1614_v19 = vsel %vm381_vm3, %v1385_v57, %v1612_v14  ;;  %v1608_v23 = vunpack.c.l.b16 %v1600_v18 }
  0x7c   : > { %2029 = vmatpush3.bf16.msra.mxu1 %v2168_v35  ;;  %v1164_v12 = vsel %vm393_vm7, %v1163_v3, %v1162_v5  ;;  %v1392_v16 = vsel %vm393_vm7, %v1391_v7, %v1390_v9  ;;  %v1616_v21 = vsel %vm384_vm4, %v1387_v62, %v1614_v19  ;;  %v1948_v62 = vld [vmem:[%s2749_s2] ss:$0 sm:$0xff] }
  0x7d   : > { %2030 = vmatprep.subr.bf16.mxu1 %v2335_v0  ;;  %v1165_v32 = vpack.c.b16 %v1164_v12, %v1164_v12  ;;  %v1393_v20 = vpack.c.b16 %v1392_v16, %v1392_v16  ;;  %v1618_v10 = vsel %vm387_vm5, %v1389_v2, %v1616_v21  ;;  %v1621_v25 = vrot.slane %v1608_v23, 1 }
  0x7e   : > { %2019 = vmatpush3.bf16.msra.mxu0 %v2169_v44  ;;  %v1620_v26 = vsel %vm390_vm6, %v1391_v7, %v1618_v10 }
  0x7f   : > { %2036 = vmatprep.subr.bf16.mxu0 %v2335_v0  ;;  %v1622_v29 = vsel %vm393_vm7, %v1621_v25, %v1620_v26 }
  0x80   : > { %2031 = vmatpush3.bf16.msra.mxu1 %v2170_v50  ;;  %v1623_v30 = vpack.c.b16 %v1622_v29, %v1622_v29 }
  0x81   : > { %2021 = vmatmul.mubr.msk.bf16.vlgmr.msra.gmra.mrb[4].mxu0 %vm420_vm8, %v707_v28  ;;  %2048 = vmatprep.subr.bf16.mxu1 %v2335_v0 }
  0x82   : > { %2037 = vmatpush3.bf16.msra.mxu0 %v2171_v36  ;;  %2044 = vmatprep.mubr.msk.bf16.mxu0 %vm2336_vm0, %v2335_v0 }
  0x83   : > { %2033 = vmatmul.mubr.msk.bf16.vlgmr.msra.gmra.mrb[4].mxu1 %vm420_vm8, %v935_v56  ;;  %2038 = vmatprep.subr.bf16.mxu0 %v2335_v0 }
  0x84   : > { %2049 = vmatpush3.bf16.msra.mxu1 %v2172_v58  ;;  %2056 = vmatprep.mubr.msk.bf16.mxu1 %vm2336_vm0, %v2335_v0 }
  0x85   : > { %2050 = vmatprep.subr.bf16.mxu1 %v2335_v0 }
  0x86   : > { %2039 = vmatpush3.bf16.msra.mxu0 %v2173_v60 }
  0x87   : > { %2040 = vmatprep.subr.bf16.mxu0 %v2335_v0 }
  0x88   : > { %2051 = vmatpush3.bf16.msra.mxu1 %v2174_v63 }
  0x89   : > { %2052 = vmatprep.subr.bf16.mxu1 %v2335_v0 }
  0x8a   : > { %2041 = vmatpush3.bf16.msra.mxu0 %v2175_v47 }
  0x8b   : > { %2042 = vmatprep.subr.bf16.mxu0 %v2335_v0 }
  0x8c   : > { %2053 = vmatpush3.bf16.msra.mxu1 %v2176_v6 }
  0x8d   : > { %2054 = vmatprep.subr.bf16.mxu1 %v2335_v0 }
  0x8e   : > { %2043 = vmatpush3.bf16.msra.mxu0 %v2177_v11 }
  0x8f   : > { %2060 = vmatprep.subr.bf16.mxu0 %v2335_v0 }
  0x90   : > { %2055 = vmatpush3.bf16.msra.mxu1 %v2178_v15 }
  0x91   : > { %2045 = vmatmul.mubr.msk.bf16.vlgmr.msra.gmra.mrb[8].mxu0 %vm420_vm8, %v1165_v32 }
  0x92   : > { %2061 = vmatpush3.bf16.msra.mxu0 %v2179_v17  ;;  %2068 = vmatprep.mubr.msk.bf16.mxu0 %vm2336_vm0, %v2335_v0 }
  0x93   : > { %2057 = vmatmul.mubr.msk.bf16.vlgmr.msra.gmra.mrb[8].mxu1 %vm420_vm8, %v1393_v20  ;;  %2062 = vmatprep.subr.bf16.mxu0 %v2335_v0 }
  0x96   : > { %2063 = vmatpush3.bf16.msra.mxu0 %v2180_v22 }
  0x97   : > { %2064 = vmatprep.subr.bf16.mxu0 %v2335_v0 }
  0x9a   : > { %2065 = vmatpush3.bf16.msra.mxu0 %v2181_v24 }
  0x9b   : > { %2066 = vmatprep.subr.bf16.mxu0 %v2335_v0 }
  0x9e   : > { %2067 = vmatpush3.bf16.msra.mxu0 %v2182_v27 }
  0xa1   : > { %2069 = vmatmul.mubr.msk.bf16.vlgmr.msra.gmra.mrb[12].mxu0 %vm420_vm8, %v1623_v30 }
 0x144   : > { %v458_v31 = vpop.f32.mrb[0].mxu0 }
 0x145   : > { %v1998_v33 = vpop.f32.mrb[1].mxu0 }
 0x146   : > { %v540_v34 = vpop.f32.mrb[0].mxu1  ;;  %v461_v35 = vpop.f32.mrb[2].mxu0 }
 0x147   : > { %v541_v37 = vadd.f32 %v540_v34, %v458_v31  ;;  %v1999_v38 = vpop.f32.mrb[3].mxu0  ;;  %v2010_v39 = vpop.f32.mrb[1].mxu1 }
 0x148   : > { %v543_v41 = vpop.f32.mrb[2].mxu1 }
 0x149   : > { %v2011_v42 = vpop.f32.mrb[3].mxu1 }
 0x154   : > { %v769_v44 = vpop.f32.mrb[4].mxu0 }
 0x155   : > { %v775_v45 = vadd.f32 %v769_v44, %v541_v37  ;;  %v2022_v46 = vpop.f32.mrb[5].mxu0 }
 0x156   : > { %v772_v48 = vpop.f32.mrb[6].mxu0  ;;  %v997_v49 = vpop.f32.mrb[4].mxu1 }
 0x157   : > { %v1003_v0 = vadd.f32 %v997_v49, %v775_v45  ;;  %v2023_v50 = vpop.f32.mrb[7].mxu0  ;;  %v2034_v51 = vpop.f32.mrb[5].mxu1 }
 0x158   : > { %v1000_v52 = vpop.f32.mrb[6].mxu1 }
 0x159   : > { %v2035_v28 = vpop.f32.mrb[7].mxu1 }
 0x164   : > { %v1227_v53 = vpop.f32.mrb[8].mxu0 }
 0x165   : > { %v1233_v36 = vadd.f32 %v1227_v53, %v1003_v0  ;;  %v2046_v54 = vpop.f32.mrb[9].mxu0 }
 0x166   : > { %v1230_v55 = vpop.f32.mrb[10].mxu0  ;;  %v1455_v56 = vpop.f32.mrb[8].mxu1 }
 0x167   : > { %v1461_v57 = vadd.f32 %v1455_v56, %v1233_v36  ;;  %v2047_v58 = vpop.f32.mrb[11].mxu0  ;;  %v2058_v40 = vpop.f32.mrb[9].mxu1 }
 0x168   : > { %v1458_v59 = vpop.f32.mrb[10].mxu1 }
 0x169   : > { %v2059_v60 = vpop.f32.mrb[11].mxu1 }
 0x174   : > { %v1685_v61 = vpop.f32.mrb[12].mxu0 }
 0x175   : > { %v1691_v43 = vadd.f32 %v1685_v61, %v1461_v57  ;;  %v2070_v63 = vpop.f32.mrb[13].mxu0 }
 0x176   : > { %v1688_v1 = vpop.f32.mrb[14].mxu0 }
 0x177   : > { %v1699_v2 = vadd.f32 %v1948_v62, %v1691_v43  ;;  %v2071_v47 = vpop.f32.mrb[15].mxu0 }
 0x179   : > { %1700 = vst [vmem:[%s217_s8] sm:$0xff] %v1699_v2 }
 0x17a   : > { %2254 = shalt.err (!%p2251_p5)
}
 0x17b   : > { %s2255_s25 = scalar_lea.hbm %s2698_s6, 128  ;;  %s2259_s26 = scalar_lea.hbm %s2750_s3, 256 }
 0x17c   : > { %p2256_p9 = scmp.ne.s32.totalorder %s2698_s6, %s2255_s25  ;;  %p2260_p3 = scmp.lt.u32.totalorder %s2698_s6, %s2750_s3 }
 0x17d   : > { %p2261_p7 = scmp.lt.u32.totalorder %s2259_s26, %s2255_s25  ;;  %p2263_p4 = scmp.lt.u32.totalorder %s2255_s25, %s2698_s6 }
 0x17e   : > { %p2257_p1 = pnand %p2256_p9, %p2451_p10 }
 0x17f   : > { %p2262_p11 = por %p2261_p7, %p2260_p3 }
 0x180   : > { %p2258_p2 = pneg %p2257_p1 }
 0x181   : > { %p2264_p6 = por %p2263_p4, %p2262_p11 }
 0x183   : > { %p2265_p8 = pnand %p2264_p6, %p2258_p2 }
 0x185   : > { %2268 = shalt.err (!%p2265_p8)
}
 0x186   : > { %2081 = dma.vmem_to_hbm [thread:$0]  (%p2451_p10), %s2700_s10, 128, %s2698_s6, %s1702_s9  }
 0x187 PF: > { %s1728_s24 = sand.u32 1, %s2307_s12   ;;  %p2767_p12 = scmp.ne.s32.totalorder %s2758_s23, 0 }
 0x188   : > { %p2768_p13 = scmp.ge.s32.totalorder %s2327_s17, 2  ;;  %s1729_s7 = scalar_lea.sflag [#allocation4], %s1728_s24 }
 0x18a   : > { %p2092_p0 = pnand %p2768_p13, %p2767_p12 }
 0x18c   : > { %2302 = dma.done.wait (!%p2092_p0), %s1729_s7, 128  }
 0x18d   : > { %2304 = vsyncadd (!%p2092_p0), %s1729_s7, 4294967168  ;;  %s20_s17 = sadd.s32 1, %s2327_s17   ;;  %s2769_s12 = smov %s2311_s13 }
 0x18e   : > { %p17_p5 = scmp.ge.s32.totalorder %s20_s17, 4   ;;  %s2770_s13 = smov %s2315_s14 }
 0x18f   : > { %s2771_s14 = smov %s2460_s5  ;;  %s2772_s15 = smov %s2323_s16 }
 0x190   : > { %s2773_s16 = smov %s2775_s28  ;;  %19 = sbr.rel (!%p17_p5) target bundleno = 7 (0x7), region = 91 }
 0x197   :  { %1734 = vsyncpa [#allocation3], 1 }
 0x198   :  { %1736 = vsyncpa [#allocation3 + $0x1], 1 }
 0x199   :  { %1737 = vsyncpa [#allocation6], 1 }
 0x19a   :  { %1738 = vsyncpa [#allocation4], 1 }
 0x19b   :  { %1740 = vsyncpa [#allocation4 + $0x1], 1 }

</bundles_post_ra>
